<compile_context>
chip_gen: v7x
topology: tpu7x:2x2x1
jax: 0.10.0
libtpu: 0.0.40
codegen_flags: <defaults>
</compile_context>

<pallas_src>
import jax
import jax.numpy as jnp
from jax.experimental import pallas as pl
from jax.experimental.pallas import tpu as pltpu

EPS = 1e-5


def _round_up(x, m):
    return ((x + m - 1) // m) * m


def prenorm_kernel(x_ref, w_ref, wb_ref, o_ref, y_ref):
    # x_ref : (tile_m, D)      input rows (any float dtype)
    # w_ref : (D, tile_n) bf16 weight with gamma folded in
    # wb_ref: (1, tile_n) f32  bias with beta@W folded in
    # o_ref : (tile_m, tile_n) output tile
    # y_ref : (tile_m, D) bf16 VMEM scratch caching normalized activations
    #         across all j (D_out) tiles of the same row block.
    @pl.when(pl.program_id(1) == 0)
    def _():
        x = x_ref[...].astype(jnp.float32)
        # One-pass LayerNorm statistics (biased variance, like nn.LayerNorm).
        mean = jnp.mean(x, axis=-1, keepdims=True)                # (tile_m, 1)
        meansq = jnp.mean(x * x, axis=-1, keepdims=True)          # (tile_m, 1)
        var = meansq - mean * mean
        inv = jax.lax.rsqrt(var + EPS)
        y_ref[...] = ((x - mean) * inv).astype(jnp.bfloat16)

    # fn = Linear: bf16 MXU matmul, f32 accumulation; bias added in f32.
    acc = jnp.dot(y_ref[...], w_ref[...],
                  preferred_element_type=jnp.float32)             # (tile_m, tile_n)
    o_ref[...] = (acc + wb_ref[...]).astype(o_ref.dtype)


def prenorm_linear(x, gamma, beta, w, wb, *, tile_m=None, tile_n=256):
    """x: [B, N, D]; gamma/beta: [D]; w: [D, D_out]; wb: [D_out]."""
    B, N, D = x.shape
    D_out = w.shape[1]
    M = B * N

    Dout_pad = _round_up(D_out, 128)

    # Fold gamma into the weight and beta into the bias (done once, in f32):
    #   (xhat*gamma + beta) @ W + b = xhat @ (gamma[:,None]*W) + (beta @ W + b)
    w32 = w.astype(jnp.float32)
    w_eff = gamma.astype(jnp.float32)[:, None] * w32
    b_eff = beta.astype(jnp.float32) @ w32 + wb.astype(jnp.float32)
    w_bf = w_eff.astype(jnp.bfloat16)
    if Dout_pad != D_out:
        w_bf = jnp.pad(w_bf, ((0, 0), (0, Dout_pad - D_out)))
        b_eff = jnp.pad(b_eff, ((0, Dout_pad - D_out),))
    wb2 = b_eff.reshape(1, Dout_pad)

    # W resident in VMEM (constant block index -> single DMA) when small enough.
    w_bytes = D * Dout_pad * 2  # bf16
    w_resident = w_bytes <= 8 * 1024 * 1024
    if w_resident:
        tile_n = Dout_pad
    else:
        tile_n = _round_up(min(tile_n, Dout_pad), 128)

    # Pick tile_m under a conservative VMEM working-set budget (safe on v7x).
    x_bytes = jnp.dtype(x.dtype).itemsize
    out_bytes = x_bytes
    VMEM_BUDGET = 40 * 1024 * 1024

    def working_set(tm):
        return (2 * tm * D * x_bytes          # double-buffered x tile
                + 2 * D * tile_n * 2          # W buffers (bf16)
                + 2 * tm * tile_n * out_bytes  # output buffers
                + 2 * tile_n * 4              # bias
                + tm * D * 2                  # bf16 y scratch
                + 3 * tm * D * 4)             # f32 LN temporaries headroom

    if tile_m is None:
        tile_m = 256
    tile_m = _round_up(min(tile_m, _round_up(M, 8)), 8)
    while tile_m > 8 and working_set(tile_m) > VMEM_BUDGET:
        tile_m = _round_up(tile_m // 2, 8)

    # Prefer a tile_m that divides M so no wrapper-side pad of x / slice of out.
    if M % tile_m != 0:
        for cand in range(tile_m, 7, -8):
            if M % cand == 0:
                tile_m = cand
                break

    M_pad = _round_up(M, tile_m)
    xf = x.reshape(M, D)
    if M_pad != M:
        # Zero rows -> mean=0, var=0, xhat=0 -> padded out rows are b_eff only;
        # they are sliced off below.
        xf = jnp.pad(xf, ((0, M_pad - M), (0, 0)))

    grid = (M_pad // tile_m, Dout_pad // tile_n)

    out = pl.pallas_call(
        prenorm_kernel,
        out_shape=jax.ShapeDtypeStruct((M_pad, Dout_pad), x.dtype),
        grid_spec=pltpu.PrefetchScalarGridSpec(
            num_scalar_prefetch=0,
            grid=grid,
            in_specs=[
                pl.BlockSpec((tile_m, D), lambda i, j: (i, 0)),    # x rows
                pl.BlockSpec((D, tile_n), lambda i, j: (0, j)),    # W (bf16, gamma folded)
                pl.BlockSpec((1, tile_n), lambda i, j: (0, j)),    # bias (f32, beta folded)
            ],
            out_specs=pl.BlockSpec((tile_m, tile_n), lambda i, j: (i, j)),
            scratch_shapes=[pltpu.VMEM((tile_m, D), jnp.bfloat16)],  # LN cache
        ),
        compiler_params=pltpu.CompilerParams(
            # j must be sequential ("arbitrary") so the LN cache computed at
            # j==0 is reused for all D_out tiles of the same row block.
            dimension_semantics=("parallel", "arbitrary"),
            vmem_limit_bytes=48 * 1024 * 1024),
    )(xf, w_bf, wb2)

    if M_pad != M or Dout_pad != D_out:
        out = out[:M, :D_out]
    # TODO(synk): emit bf16 output if the consumer tolerates it (halves HBM writes).
    return out.reshape(B, N, D_out)


def prenorm_linear_ref_f32(x, gamma, beta, w, wb):
    xf = x.astype(jnp.float32)
    mean = jnp.mean(xf, axis=-1, keepdims=True)
    var = jnp.mean((xf - mean) ** 2, axis=-1, keepdims=True)
    y = (xf - mean) * jax.lax.rsqrt(var + EPS) * gamma + beta
    return (y @ w.astype(jnp.float32) + wb.astype(jnp.float32)).astype(x.dtype)


def prenorm_linear_ref_bf16(x, gamma, beta, w, wb):
    # Mirrors the kernel's precision recipe (f32 one-pass LN stats, gamma/beta
    # folded into a bf16 weight / f32 bias, bf16 matmul with f32 accumulation).
    xf = x.astype(jnp.float32)
    mean = jnp.mean(xf, axis=-1, keepdims=True)
    meansq = jnp.mean(xf * xf, axis=-1, keepdims=True)
    var = meansq - mean * mean
    xhat = (xf - mean) * jax.lax.rsqrt(var + EPS)
    w32 = w.astype(jnp.float32)
    w_eff = (gamma.astype(jnp.float32)[:, None] * w32).astype(jnp.bfloat16)
    b_eff = beta.astype(jnp.float32) @ w32 + wb.astype(jnp.float32)
    out = jnp.dot(xhat.astype(jnp.bfloat16), w_eff,
                  preferred_element_type=jnp.float32) + b_eff
    return out.astype(x.dtype)


if __name__ == "__main__":
    B, N, D = 2, 8, 32
    key = jax.random.PRNGKey(0)
    kx, kg, kb, kw, kwb = jax.random.split(key, 5)

    x = jax.random.normal(kx, (B, N, D), dtype=jnp.float32)
    # LayerNorm default params (ones/zeros), perturbed so gamma/beta matter.
    gamma = jnp.ones((D,), jnp.float32) + 0.1 * jax.random.normal(kg, (D,), jnp.float32)
    beta = 0.1 * jax.random.normal(kb, (D,), jnp.float32)
    w = jax.random.normal(kw, (D, D), jnp.float32) / jnp.sqrt(D)
    wb = 0.1 * jax.random.normal(kwb, (D,), jnp.float32)
    D_out = w.shape[1]

    out = prenorm_linear(x, gamma, beta, w, wb)
    jax.block_until_ready(out)

    ref_bf16 = prenorm_linear_ref_bf16(x, gamma, beta, w, wb)
    ref_f32 = prenorm_linear_ref_f32(x, gamma, beta, w, wb)

    assert out.shape == (B, N, D_out)
    # Tight check against a reference using the same precision recipe.
    assert jnp.allclose(out, ref_bf16, atol=5e-3, rtol=5e-3)
    # Loose check against the full-f32 reference (bf16 matmul rounding).
    assert jnp.allclose(out, ref_f32, atol=5e-2, rtol=5e-2)
    print("KERNEL_OK")
</pallas_src>

<mosaic_0001>
module attributes {stable_mosaic.version = 11 : i64} {
  func.func @prenorm_kernel(%arg0: i32, %arg1: i32, %arg2: memref<16x32xf32, #tpu.memory_space<vmem>>, %arg3: memref<32x128xbf16, #tpu.memory_space<vmem>>, %arg4: memref<1x128xf32, #tpu.memory_space<vmem>>, %arg5: memref<16x128xf32, #tpu.memory_space<vmem>>, %arg6: memref<16x32xbf16, #tpu.memory_space<vmem>>) attributes {dimension_semantics = [#tpu.dimension_semantics<parallel>, #tpu.dimension_semantics<arbitrary>], iteration_bounds = array<i64: 1, 1>, scalar_prefetch = 0 : i64, scratch_operands = 1 : i64, tpu.core_type = #tpu.core_type<tc>, window_params = [{transform_indices = @transform_0, window_bounds = array<i64: 16, 32>}, {transform_indices = @transform_1, window_bounds = array<i64: 32, 128>}, {transform_indices = @transform_2, window_bounds = array<i64: 1, 128>}, {transform_indices = @transform_3, window_bounds = array<i64: 16, 128>}]} {
    %c0_i32 = arith.constant 0 : i32
    %0 = arith.cmpi eq, %arg1, %c0_i32 : i32
    %1 = arith.extui %0 : i1 to i32
    %c0_i32_0 = arith.constant 0 : i32
    %2 = arith.cmpi ne, %1, %c0_i32_0 : i32
    scf.if %2 {
      %c0_8 = arith.constant 0 : index
      %c0_9 = arith.constant 0 : index
      %10 = vector.load %arg2[%c0_8, %c0_9] : memref<16x32xf32, #tpu.memory_space<vmem>>, vector<16x32xf32>
      %cst_10 = arith.constant dense<0.000000e+00> : vector<16xf32>
      %11 = vector.multi_reduction <add>, %10, %cst_10 [1] : vector<16x32xf32> to vector<16xf32>
      %12 = vector.shape_cast %11 : vector<16xf32> to vector<16x1xf32>
      %cst_11 = arith.constant 3.200000e+01 : f32
      %13 = vector.broadcast %cst_11 : f32 to vector<16x1xf32>
      %14 = arith.divf %12, %13 : vector<16x1xf32>
      %15 = arith.mulf %10, %10 : vector<16x32xf32>
      %cst_12 = arith.constant dense<0.000000e+00> : vector<16xf32>
      %16 = vector.multi_reduction <add>, %15, %cst_12 [1] : vector<16x32xf32> to vector<16xf32>
      %17 = vector.shape_cast %16 : vector<16xf32> to vector<16x1xf32>
      %cst_13 = arith.constant 3.200000e+01 : f32
      %18 = vector.broadcast %cst_13 : f32 to vector<16x1xf32>
      %19 = arith.divf %17, %18 : vector<16x1xf32>
      %20 = arith.mulf %14, %14 : vector<16x1xf32>
      %21 = arith.subf %19, %20 : vector<16x1xf32>
      %cst_14 = arith.constant 9.99999974E-6 : f32
      %22 = vector.broadcast %cst_14 : f32 to vector<16x1xf32>
      %23 = arith.addf %21, %22 : vector<16x1xf32>
      %24 = math.rsqrt %23 : vector<16x1xf32>
      %25 = vector.broadcast %14 : vector<16x1xf32> to vector<16x32xf32>
      %26 = arith.subf %10, %25 : vector<16x32xf32>
      %27 = vector.broadcast %24 : vector<16x1xf32> to vector<16x32xf32>
      %28 = arith.mulf %26, %27 : vector<16x32xf32>
      %29 = arith.truncf %28 : vector<16x32xf32> to vector<16x32xbf16>
      %c0_15 = arith.constant 0 : index
      %c0_16 = arith.constant 0 : index
      %30 = vector.load %arg6[%c0_15, %c0_16] : memref<16x32xbf16, #tpu.memory_space<vmem>>, vector<16x32xbf16>
      tpu.vector_store %arg6[%c0_15, %c0_16], %29 {strides = array<i32>} : memref<16x32xbf16, #tpu.memory_space<vmem>>, vector<16x32xbf16>,
    } else {
    }
    %c0 = arith.constant 0 : index
    %c0_1 = arith.constant 0 : index
    %3 = vector.load %arg6[%c0, %c0_1] : memref<16x32xbf16, #tpu.memory_space<vmem>>, vector<16x32xbf16>
    %c0_2 = arith.constant 0 : index
    %c0_3 = arith.constant 0 : index
    %4 = vector.load %arg3[%c0_2, %c0_3] : memref<32x128xbf16, #tpu.memory_space<vmem>>, vector<32x128xbf16>
    %cst = arith.constant dense<0.000000e+00> : vector<16x128xf32>
    %5 = tpu.matmul %3, %4, %cst {dimension_numbers = #tpu.dot_dimension_numbers<[1], [0], [0], [1], [0, 0, 1, 1], [], []>} : vector<16x32xbf16>, vector<32x128xbf16>, vector<16x128xf32> -> vector<16x128xf32>
    %c0_4 = arith.constant 0 : index
    %c0_5 = arith.constant 0 : index
    %6 = vector.load %arg4[%c0_4, %c0_5] : memref<1x128xf32, #tpu.memory_space<vmem>>, vector<1x128xf32>
    %7 = vector.broadcast %6 : vector<1x128xf32> to vector<16x128xf32>
    %8 = arith.addf %5, %7 : vector<16x128xf32>
    %c0_6 = arith.constant 0 : index
    %c0_7 = arith.constant 0 : index
    %9 = vector.load %arg5[%c0_6, %c0_7] : memref<16x128xf32, #tpu.memory_space<vmem>>, vector<16x128xf32>
    tpu.vector_store %arg5[%c0_6, %c0_7], %8 {strides = array<i32>} : memref<16x128xf32, #tpu.memory_space<vmem>>, vector<16x128xf32>,
    return
  }
  func.func @transform_0(%arg0: i32, %arg1: i32) -> (i32, i32) {
    %c0_i32 = arith.constant 0 : i32
    %c0_i32_0 = arith.constant 0 : i32
    return %arg0, %c0_i32 : i32, i32
  }
  func.func @transform_1(%arg0: i32, %arg1: i32) -> (i32, i32) {
    %c0_i32 = arith.constant 0 : i32
    %c0_i32_0 = arith.constant 0 : i32
    return %c0_i32, %arg1 : i32, i32
  }
  func.func @transform_2(%arg0: i32, %arg1: i32) -> (i32, i32) {
    %c0_i32 = arith.constant 0 : i32
    %c0_i32_0 = arith.constant 0 : i32
    return %c0_i32, %arg1 : i32, i32
  }
  func.func @transform_3(%arg0: i32, %arg1: i32) -> (i32, i32) {
    %c0_i32 = arith.constant 0 : i32
    return %arg0, %arg1 : i32, i32
  }
}

</mosaic_0001>

<bundles_post_ra>
// kernel: tpu_custom_call.1
= control target key start
LH: loop header
LB: loop body
LE: loop exit
PB: predicated region body
PF: predicated region fallthrough
CT: control target
= control target key end

     0   :  { %8 = vsyncpa [#allocation4], 0  ;;  %s355_s0 = inlined_call_operand.hbm [shape: f32[16,32], index: 0, kind: input, shape index: {}]   ;;  %s356_s1 = inlined_call_operand.hbm [shape: bf16[32,128], index: 1, kind: input, shape index: {}]   ;;  %s357_s2 = inlined_call_operand.vmem [shape: f32[1,128], index: 2, kind: input, shape index: {}]   ;;  %s358_s3 = inlined_call_operand.hbm [shape: f32[16,128], index: 3, kind: output, shape index: {}]  }
   0x1   :  { %9 = vsyncpa [#allocation7], 0 }
   0x2   :  { %10 = vsyncpa [#allocation5], 0  ;;  %s275_s12 = smov [#allocation3]   ;;  %s203_s16 = scalar_lea.hbm %s355_s0, 256 }
   0x3   :  { %s16_s13 = sshll.u32 %s275_s12, 4  ;;  %p204_p0 = scmp.ne.s32.totalorder %s355_s0, %s203_s16  ;;  %s17_s13 = int_to_ptr.vmem [resolvable:$true] %s16_s13 }
   0x4   :  { %p207_p1 = scmp.lt.u32.totalorder %s203_s16, %s355_s0 }
   0x6   :  { %p209_p2 = pnand %p207_p1, %p204_p0 }
   0x8   :  { %212 = shalt.err (!%p209_p2)
}
   0x9   :  { %s213_s21 = scalar_lea.vmem %s17_s13, 256  ;;  %p218_p4 = scmp.lt.s32.totalorder %s17_s13, %s17_s13 }
   0xa   :  { %p214_p3 = scmp.ne.s32.totalorder %s17_s13, %s213_s21  ;;  %p219_p5 = scmp.lt.s32.totalorder %s213_s21, %s213_s21 }
   0xc   :  { %p220_p6 = por %p219_p5, %p218_p4 }
   0xe   :  { %p221_p7 = pnand %p220_p6, %p214_p3 }
  0x10   :  { %224 = shalt.err (!%p221_p7)
}
  0x11   :  { %s276_s22 = smov 128   ;;  %s277_s23 = smov 8  }
  0x12   :  { %22 = dma.hbm_to_vmem [thread:$0]  %s355_s0, 256, %s17_s13, [#allocation4], %s276_s22, %s276_s22, %s277_s23  }
  0x13   :  { %s278_s26 = smov [#allocation6]   ;;  %s225_s30 = scalar_lea.hbm %s356_s1, 256 }
  0x14   :  { %s28_s27 = sshll.u32 %s278_s26, 4  ;;  %p226_p8 = scmp.ne.s32.totalorder %s356_s1, %s225_s30  ;;  %s29_s27 = int_to_ptr.vmem [resolvable:$true] %s28_s27 }
  0x15   :  { %p229_p9 = scmp.lt.u32.totalorder %s225_s30, %s356_s1 }
  0x17   :  { %p231_p10 = pnand %p229_p9, %p226_p8 }
  0x19   :  { %234 = shalt.err (!%p231_p10)
}
  0x1a   :  { %s235_s8 = scalar_lea.vmem %s29_s27, 256  ;;  %p240_p12 = scmp.lt.s32.totalorder %s29_s27, %s29_s27 }
  0x1b   :  { %p236_p11 = scmp.ne.s32.totalorder %s29_s27, %s235_s8  ;;  %p241_p13 = scmp.lt.s32.totalorder %s235_s8, %s235_s8 }
  0x1d   :  { %p242_p0 = por %p241_p13, %p240_p12 }
  0x1f   :  { %p243_p1 = pnand %p242_p0, %p236_p11 }
  0x21   :  { %246 = shalt.err (!%p243_p1)
}
  0x22   :  { %s279_s0 = smov 64   ;;  %s280_s9 = smov 4  }
  0x23   :  { %34 = dma.hbm_to_vmem [thread:$0]  %s356_s1, 256, %s29_s27, [#allocation7], %s279_s0, %s279_s0, %s280_s9  }
  0x24   :  { %269 = dma.done.wait [#allocation4], 256  }
  0x25   :  { %270 = vsyncadd [#allocation4], 4294967040 }
  0x26   :  { %271 = dma.done.wait [#allocation7], 256  }
  0x27   :  { %272 = vsyncadd [#allocation7], 4294967040  ;;  %vm50_vm0 = vcmask 261120   ;;  %v48_v0 = vld [vmem:[#allocation3] sm:$0xff]  ;;  %v49_v1 = vld [vmem:[#allocation3 + $0x8] sm:$0xff]  ;;  %v281_v9 = vmov 0.0  }
  0x28   :  { %v51_v2 = vsel %vm50_vm0, %v48_v0, 0.0  ;;  %v60_v3 = vmul.f32 %v48_v0, %v48_v0  ;;  %v61_v4 = vmul.f32 %v49_v1, %v49_v1  ;;  %v54_v6 = vsel %vm50_vm0, %v49_v1, 0.0  ;;  %v197_v8 = vld [vmem:[#allocation6] sm:$0xff]   ;;  %180 = vmatprep.subr.bf16.mxu0 %v281_v9  ;;  %v198_v10 = vld [vmem:[#allocation6 + $0x8] sm:$0xff]   ;;  %s283_s13 = smov [#allocation8]  }
  0x29   :  { %52 = vadd.xlane.f32.xlu0 %v51_v2  ;;  %181 = vmatpush3.bf16.msra.mxu0 %v197_v8  ;;  %vm282_vm1 = vmmov 0   ;;  %v173_v33 = vld [vmem:[%s357_s2] ss:$0 sm:$0xff]  ;;  %s160_s14 = sshll.u32 %s283_s13, 4  ;;  %s161_s14 = int_to_ptr.vmem [resolvable:$true] %s160_s14 }
  0x2a   :  { %v62_v5 = vsel %vm50_vm0, %v60_v3, 0.0  ;;  %v65_v7 = vsel %vm50_vm0, %v61_v4, 0.0  ;;  %184 = vmatprep.mubr.msk.bf16.mxu0 %vm282_vm1, %v281_v9  ;;  %182 = vmatprep.subr.bf16.mxu0 %v281_v9  ;;  %s247_s15 = scalar_lea.vmem %s161_s14, 256  ;;  %p252_p3 = scmp.lt.s32.totalorder %s161_s14, %s161_s14 }
  0x2b   :  { %63 = vadd.xlane.f32.xlu1 %v62_v5  ;;  %p248_p2 = scmp.ne.s32.totalorder %s161_s14, %s247_s15  ;;  %p253_p4 = scmp.lt.s32.totalorder %s247_s15, %s247_s15 }
  0x2d   :  { %55 = vadd.xlane.f32.xlu0 %v54_v6  ;;  %183 = vmatpush3.bf16.msra.mxu0 %v198_v10  ;;  %p254_p5 = por %p253_p4, %p252_p3 }
  0x2f   :  { %66 = vadd.xlane.f32.xlu1 %v65_v7  ;;  %p255_p6 = pnand %p254_p5, %p248_p2 }
  0xb6   :  { %v53_v11 = vpop.xlane.xlu0 %52 }
  0xb7   :  { %v58_v12 = vmul.f32 0.03125, %v53_v11 }
  0xb8   :  { %v64_v13 = vpop.xlane.xlu1 %63 }
  0xb9   :  { %v70_v14 = vmul.f32 %v58_v12, %v58_v12  ;;  %v68_v15 = vmul.f32 0.03125, %v64_v13  ;;  %v78_v26 = vsub.f32 %v48_v0, %v58_v12 }
  0xba   :  { %v56_v16 = vpop.xlane.xlu0 %55 }
  0xbb   :  { %v72_v17 = vsub.f32 %v68_v15, %v70_v14  ;;  %v59_v18 = vmul.f32 0.03125, %v56_v16 }
  0xbc   :  { %v67_v19 = vpop.xlane.xlu1 %66 }
  0xbd   :  { %v74_v20 = vadd.f32 1e-05, %v72_v17  ;;  %v71_v21 = vmul.f32 %v59_v18, %v59_v18  ;;  %v69_v22 = vmul.f32 0.03125, %v67_v19  ;;  %v79_v27 = vsub.f32 %v49_v1, %v59_v18 }
  0xbf   :  { %v73_v23 = vsub.f32 %v69_v22, %v71_v21  ;;  %199 = vrsqrt.f32 %v74_v20 }
  0xc1   :  { %v75_v24 = vadd.f32 1e-05, %v73_v23 }
  0xc3   :  { %201 = vrsqrt.f32 %v75_v24 }
  0xc9   :  { %v200_v25 = vpop.eup %199 }
  0xca   :  { %v80_v29 = vmul.f32 %v200_v25, %v78_v26 }
  0xcd   :  { %v202_v28 = vpop.eup %201 }
  0xce   :  { %v81_v30 = vmul.f32 %v202_v28, %v79_v27 }
  0xd0   :  { %v82_v31 = vpack.c.bf16 %v81_v30, %v80_v29 }
  0xd2   :  { %83 = vst.msk [vmem:[#allocation2] sm:$0xff] %vm50_vm0, %v82_v31 }
  0xd9   :  { %v84_v32 = vld [vmem:[#allocation2] sm:$0xff] }
  0xda   :  { %185 = vmatmul.mubr.msk.bf16.vlgmr.msra.gmra.mrb[0].mxu0 %vm50_vm0, %v84_v32 }
 0x1ad   :  { %v146_v34 = vpop.f32.mrb[0].mxu0 }
 0x1ae   :  { %v147_v35 = vadd.f32 %v173_v33, %v146_v34  ;;  %v186_v36 = vpop.f32.mrb[1].mxu0 }
 0x1af   :  { %v149_v37 = vpop.f32.mrb[2].mxu0 }
 0x1b0   :  { %153 = vst [vmem:[#allocation8] sm:$0xff] %v147_v35  ;;  %v150_v38 = vadd.f32 %v173_v33, %v149_v37  ;;  %v187_v39 = vpop.f32.mrb[3].mxu0 }
 0x1b2   :  { %154 = vst [vmem:[#allocation8 + $0x8] sm:$0xff] %v150_v38 }
 0x1b3   :  { %258 = shalt.err (!%p255_p6)
}
 0x1b4   :  { %s259_s17 = scalar_lea.hbm %s358_s3, 256 }
 0x1b5   :  { %p260_p7 = scmp.ne.s32.totalorder %s358_s3, %s259_s17  ;;  %p263_p8 = scmp.lt.u32.totalorder %s259_s17, %s358_s3 }
 0x1b7   :  { %p265_p9 = pnand %p263_p8, %p260_p7 }
 0x1b9   :  { %268 = shalt.err (!%p265_p9)
}
 0x1ba   :  { %166 = dma.vmem_to_hbm [thread:$0]  %s161_s14, 256, %s358_s3, [#allocation5], %s276_s22, %s276_s22, %s277_s23  }
 0x1bb   :  { %273 = dma.done.wait [#allocation5], 256  }
 0x1bc   :  { %274 = vsyncadd [#allocation5], 4294967040 }
 0x1bd   :  { %170 = vsyncpa [#allocation4], 1 }
 0x1be   :  { %171 = vsyncpa [#allocation7], 1 }
 0x1bf   :  { %172 = vsyncpa [#allocation5], 1 }

</bundles_post_ra>
